<compile_context>
chip_gen: v5e
topology: v5e:2x2
jax: 0.10.0
libtpu: 0.0.40
codegen_flags: <defaults>
</compile_context>

<pallas_src>
import functools

import jax
import jax.numpy as jnp
from jax import lax
from jax.experimental import pallas as pl
from jax.experimental.pallas import tpu as pltpu

_DELTA = 10.0
_CLIP_MIN = 1e-8

_LANES = 128
_ROW_ALIGN = 32            # covers f32 (8,128), bf16 (16,128), int8/fp8 (32,128)
_MAX_BLOCK_ROWS = 8192     # (8192, 128) f32 block = 4 MiB per input
_VMEM_LIMIT_BYTES = 32 * 1024 * 1024


def _round_up(x, m):
    return ((x + m - 1) // m) * m


def _detect_num_tensorcores():
    """2 on v7x (two TensorCores per chip), else 1. Safe fallback: 1."""
    try:
        kind = jax.devices()[0].device_kind.lower().replace(" ", "")
        if "v7" in kind or "tpu7" in kind:
            return 2
    except Exception:
        pass
    return 1


def _huber_sum_kernel(pred_ref, target_ref, out_ref, acc_ref, *,
                      n_rows, block_rows, blocks_per_core, acc_rows):
    c = pl.program_id(0)          # core / leading axis
    j = pl.program_id(1)          # row-block within this core (reduction axis)

    @pl.when(j == 0)
    def _():
        acc_ref[...] = jnp.zeros_like(acc_ref)

    # Row-only validity mask (cheap): kills (a) rows of the last block that
    # overhang the array and (b) duplicate blocks whose data index was clamped.
    # The sub-row tail needs no mask: the wrapper zero-pads to a 32x128
    # multiple and clip() maps both operands to 1e-8 there, so d == 0.
    logical_block = c * blocks_per_core + j
    row0 = logical_block * block_rows
    rows_iota = lax.broadcasted_iota(jnp.int32, (block_rows, _LANES), 0)
    valid = (row0 + rows_iota) < n_rows

    # Inputs arrive in native dtype (half the HBM traffic for bf16); cast here.
    p = jnp.maximum(pred_ref[...].astype(jnp.float32), _CLIP_MIN)
    t = jnp.maximum(target_ref[...].astype(jnp.float32), _CLIP_MIN)

    d = jnp.where(valid, p - t, 0.0)   # masked elements -> d = 0 -> zero loss
    ad = jnp.abs(d)
    elem = jnp.where(ad <= _DELTA, 0.5 * d * d, _DELTA * (ad - 0.5 * _DELTA))

    # Fold the block into the small accumulator with pure VALU adds
    # (layout-preserving reshape: splits the major dim only).
    acc_ref[...] += elem.reshape(-1, acc_rows, _LANES).sum(axis=0)

    @pl.when(j == pl.num_programs(1) - 1)
    def _():
        total = jnp.sum(acc_ref[...])  # small cross-lane reduce, once per core
        out_ref[...] = jnp.zeros_like(out_ref) + total


def mse_loss(pred, target):
    """Pallas equivalent of MseLoss.forward (HuberLoss delta=10, mean)."""
    assert pred.shape == target.shape
    n_elems = pred.size  # Python int at trace time

    num_cores = _detect_num_tensorcores()

    # Flat, lane-dense (rows, 128) slab, rows a multiple of 32 sublanes.
    # For sizes divisible by 32*128 this is a metadata-only reshape; otherwise
    # a small zero pad (clip makes the pad contribute exactly 0 loss).
    p_flat = pred.reshape(-1)
    t_flat = target.reshape(-1)
    padded = _round_up(n_elems, _ROW_ALIGN * _LANES)
    if padded != n_elems:
        pad = padded - n_elems
        p_flat = jnp.pad(p_flat, (0, pad))
        t_flat = jnp.pad(t_flat, (0, pad))
    rows = padded // _LANES
    p2d = p_flat.reshape(rows, _LANES)
    t2d = t_flat.reshape(rows, _LANES)

    # Tile sizing: up to 4 MiB f32 per input block, split across cores.
    block_rows = min(_MAX_BLOCK_ROWS,
                     _round_up(pl.cdiv(rows, num_cores), _ROW_ALIGN))
    total_blocks = pl.cdiv(rows, block_rows)
    blocks_per_core = pl.cdiv(total_blocks, num_cores)

    # Accumulator rows: largest of (128, 64, 32) that divides block_rows.
    acc_rows = 32
    for cand in (128, 64, 32):
        if block_rows % cand == 0:
            acc_rows = cand
            break

    def data_map(c, j):
        # Clamp so "excess" blocks re-read a valid block; their contribution is
        # zeroed in-kernel via the logical row mask.
        return (jnp.minimum(c * blocks_per_core + j, total_blocks - 1), 0)

    kernel = functools.partial(
        _huber_sum_kernel,
        n_rows=rows,
        block_rows=block_rows,
        blocks_per_core=blocks_per_core,
        acc_rows=acc_rows,
    )

    grid_spec = pltpu.PrefetchScalarGridSpec(
        num_scalar_prefetch=0,
        grid=(num_cores, blocks_per_core),
        in_specs=[
            pl.BlockSpec((block_rows, _LANES), data_map),
            pl.BlockSpec((block_rows, _LANES), data_map),
        ],
        out_specs=pl.BlockSpec((1, 8, _LANES), lambda c, j: (c, 0, 0)),
        scratch_shapes=[pltpu.VMEM((acc_rows, _LANES), jnp.float32)],
    )
    out_shape = jax.ShapeDtypeStruct((num_cores, 8, _LANES), jnp.float32)

    if num_cores > 1:
        # Only core_parallel-style semantics guarantee the 2-TC split on v7x.
        core_par = getattr(pltpu, "CORE_PARALLEL", "parallel")
        dim_sem_candidates = [(core_par, "arbitrary"), ("parallel", "arbitrary")]
    else:
        dim_sem_candidates = [("arbitrary", "arbitrary")]

    out = None
    last_err = None
    for dim_sem in dim_sem_candidates:
        try:
            out = pl.pallas_call(
                kernel,
                out_shape=out_shape,
                grid_spec=grid_spec,
                compiler_params=pltpu.CompilerParams(
                    dimension_semantics=dim_sem,
                    vmem_limit_bytes=_VMEM_LIMIT_BYTES),
            )(p2d, t2d)
            break
        except Exception as e:  # fall back to plain "parallel" semantics
            last_err = e
    if out is None:
        raise last_err

    # out[c] holds core c's partial sum broadcast across an (8,128) slab.
    partial_sums = out[:, 0, 0]
    return partial_sums.sum() * (1.0 / n_elems)


def _reference(pred, target):
    p = jnp.maximum(pred.astype(jnp.float32), _CLIP_MIN)
    t = jnp.maximum(target.astype(jnp.float32), _CLIP_MIN)
    d = p - t
    ad = jnp.abs(d)
    elem = jnp.where(ad <= _DELTA, 0.5 * d * d, _DELTA * (ad - 0.5 * _DELTA))
    return jnp.mean(elem)


if __name__ == "__main__":
    key = jax.random.PRNGKey(0)
    kp, kt = jax.random.split(key)
    shape = (2, 4, 16, 16)  # NCHW
    pred = jax.random.normal(kp, shape, dtype=jnp.float32) * 15.0   # both branches
    target = jax.random.normal(kt, shape, dtype=jnp.float32) * 15.0

    loss = mse_loss(pred, target)
    jax.block_until_ready(loss)

    ref = _reference(pred, target)
    assert jnp.allclose(loss, ref, rtol=1e-5, atol=1e-5), (loss, ref)
    print("KERNEL_OK")
</pallas_src>

<mosaic_0001>
module attributes {stable_mosaic.version = 11 : i64} {
  func.func @_huber_sum_kernel(%arg0: i32, %arg1: i32, %arg2: memref<32x128xf32, #tpu.memory_space<vmem>>, %arg3: memref<32x128xf32, #tpu.memory_space<vmem>>, %arg4: memref<1x8x128xf32, #tpu.memory_space<vmem>>, %arg5: memref<32x128xf32, #tpu.memory_space<vmem>>) attributes {dimension_semantics = [#tpu.dimension_semantics<arbitrary>, #tpu.dimension_semantics<arbitrary>], iteration_bounds = array<i64: 1, 1>, scalar_prefetch = 0 : i64, scratch_operands = 1 : i64, tpu.core_type = #tpu.core_type<tc>, window_params = [{transform_indices = @transform_0, window_bounds = array<i64: 32, 128>}, {transform_indices = @transform_1, window_bounds = array<i64: 32, 128>}, {transform_indices = @transform_2, window_bounds = array<i64: 1, 8, 128>}]} {
    %c0_i32 = arith.constant 0 : i32
    %0 = arith.cmpi eq, %arg1, %c0_i32 : i32
    %1 = arith.extui %0 : i1 to i32
    %c0_i32_0 = arith.constant 0 : i32
    %2 = arith.cmpi ne, %1, %c0_i32_0 : i32
    scf.if %2 {
      %cst_18 = arith.constant 0.000000e+00 : f32
      %39 = vector.broadcast %cst_18 : f32 to vector<32x128xf32>
      %c0_19 = arith.constant 0 : index
      %c0_20 = arith.constant 0 : index
      %40 = vector.load %arg5[%c0_19, %c0_20] : memref<32x128xf32, #tpu.memory_space<vmem>>, vector<32x128xf32>
      tpu.vector_store %arg5[%c0_19, %c0_20], %39 {strides = array<i32>} : memref<32x128xf32, #tpu.memory_space<vmem>>, vector<32x128xf32>,
    } else {
    }
    %c1_i32 = arith.constant 1 : i32
    %3 = arith.muli %arg0, %c1_i32 : i32
    %4 = arith.addi %3, %arg1 : i32
    %c32_i32 = arith.constant 32 : i32
    %5 = arith.muli %4, %c32_i32 : i32
    %6 = tpu.iota {dimensions = array<i32: 0>} : vector<32x128xi32>
    %7 = vector.broadcast %5 : i32 to vector<32x128xi32>
    %8 = arith.addi %7, %6 : vector<32x128xi32>
    %c32_i32_1 = arith.constant 32 : i32
    %9 = vector.broadcast %c32_i32_1 : i32 to vector<32x128xi32>
    %10 = arith.cmpi slt, %8, %9 : vector<32x128xi32>
    %c0 = arith.constant 0 : index
    %c0_2 = arith.constant 0 : index
    %11 = vector.load %arg2[%c0, %c0_2] : memref<32x128xf32, #tpu.memory_space<vmem>>, vector<32x128xf32>
    %cst = arith.constant 9.99999993E-9 : f32
    %12 = vector.broadcast %cst : f32 to vector<32x128xf32>
    %13 = arith.maximumf %11, %12 : vector<32x128xf32>
    %c0_3 = arith.constant 0 : index
    %c0_4 = arith.constant 0 : index
    %14 = vector.load %arg3[%c0_3, %c0_4] : memref<32x128xf32, #tpu.memory_space<vmem>>, vector<32x128xf32>
    %cst_5 = arith.constant 9.99999993E-9 : f32
    %15 = vector.broadcast %cst_5 : f32 to vector<32x128xf32>
    %16 = arith.maximumf %14, %15 : vector<32x128xf32>
    %17 = arith.subf %13, %16 : vector<32x128xf32>
    %cst_6 = arith.constant 0.000000e+00 : f32
    %18 = vector.broadcast %cst_6 : f32 to vector<32x128xf32>
    %19 = arith.select %10, %17, %18 : vector<32x128xi1>, vector<32x128xf32>
    %20 = math.absf %19 : vector<32x128xf32>
    %cst_7 = arith.constant 1.000000e+01 : f32
    %21 = vector.broadcast %cst_7 : f32 to vector<32x128xf32>
    %22 = arith.cmpf ole, %20, %21 : vector<32x128xf32>
    %cst_8 = arith.constant 5.000000e-01 : f32
    %23 = vector.broadcast %cst_8 : f32 to vector<32x128xf32>
    %24 = arith.mulf %23, %19 : vector<32x128xf32>
    %25 = arith.mulf %24, %19 : vector<32x128xf32>
    %cst_9 = arith.constant 5.000000e+00 : f32
    %26 = vector.broadcast %cst_9 : f32 to vector<32x128xf32>
    %27 = arith.subf %20, %26 : vector<32x128xf32>
    %cst_10 = arith.constant 1.000000e+01 : f32
    %28 = vector.broadcast %cst_10 : f32 to vector<32x128xf32>
    %29 = arith.mulf %28, %27 : vector<32x128xf32>
    %30 = arith.select %22, %25, %29 : vector<32x128xi1>, vector<32x128xf32>
    %c0_11 = arith.constant 0 : index
    %c0_12 = arith.constant 0 : index
    %31 = vector.load %arg5[%c0_11, %c0_12] : memref<32x128xf32, #tpu.memory_space<vmem>>, vector<32x128xf32>
    %32 = vector.shape_cast %30 : vector<32x128xf32> to vector<1x32x128xf32>
    %cst_13 = arith.constant dense<0.000000e+00> : vector<32x128xf32>
    %33 = vector.multi_reduction <add>, %32, %cst_13 [0] : vector<1x32x128xf32> to vector<32x128xf32>
    %34 = arith.addf %31, %33 : vector<32x128xf32>
    %c0_14 = arith.constant 0 : index
    %c0_15 = arith.constant 0 : index
    %35 = vector.load %arg5[%c0_14, %c0_15] : memref<32x128xf32, #tpu.memory_space<vmem>>, vector<32x128xf32>
    tpu.vector_store %arg5[%c0_14, %c0_15], %34 {strides = array<i32>} : memref<32x128xf32, #tpu.memory_space<vmem>>, vector<32x128xf32>,
    %c0_i32_16 = arith.constant 0 : i32
    %36 = arith.cmpi eq, %arg1, %c0_i32_16 : i32
    %37 = arith.extui %36 : i1 to i32
    %c0_i32_17 = arith.constant 0 : i32
    %38 = arith.cmpi ne, %37, %c0_i32_17 : i32
    scf.if %38 {
      %c0_18 = arith.constant 0 : index
      %c0_19 = arith.constant 0 : index
      %39 = vector.load %arg5[%c0_18, %c0_19] : memref<32x128xf32, #tpu.memory_space<vmem>>, vector<32x128xf32>
      %40 = vector.shape_cast %39 : vector<32x128xf32> to vector<1x32x128xf32>
      %cst_20 = arith.constant dense<0.000000e+00> : vector<1xf32>
      %41 = vector.multi_reduction <add>, %40, %cst_20 [1, 2] : vector<1x32x128xf32> to vector<1xf32>
      %42 = vector.shape_cast %41 : vector<1xf32> to vector<1x1x1xf32>
      %43 = vector.extract %42[0, 0, 0] : f32 from vector<1x1x1xf32>
      %cst_21 = arith.constant 0.000000e+00 : f32
      %44 = vector.broadcast %cst_21 : f32 to vector<1x8x128xf32>
      %45 = vector.broadcast %43 : f32 to vector<1x8x128xf32>
      %46 = arith.addf %44, %45 : vector<1x8x128xf32>
      %c0_22 = arith.constant 0 : index
      %c0_23 = arith.constant 0 : index
      %c0_24 = arith.constant 0 : index
      %47 = vector.load %arg4[%c0_22, %c0_23, %c0_24] : memref<1x8x128xf32, #tpu.memory_space<vmem>>, vector<1x8x128xf32>
      tpu.vector_store %arg4[%c0_22, %c0_23, %c0_24], %46 {strides = array<i32>} : memref<1x8x128xf32, #tpu.memory_space<vmem>>, vector<1x8x128xf32>,
    } else {
    }
    return
  }
  func.func @transform_0(%arg0: i32, %arg1: i32) -> (i32, i32) {
    %c1_i32 = arith.constant 1 : i32
    %0 = arith.muli %arg0, %c1_i32 : i32
    %1 = arith.addi %0, %arg1 : i32
    %c0_i32 = arith.constant 0 : i32
    %2 = arith.minsi %1, %c0_i32 : i32
    %c0_i32_0 = arith.constant 0 : i32
    %c0_i32_1 = arith.constant 0 : i32
    return %2, %c0_i32_0 : i32, i32
  }
  func.func @transform_1(%arg0: i32, %arg1: i32) -> (i32, i32) {
    %c1_i32 = arith.constant 1 : i32
    %0 = arith.muli %arg0, %c1_i32 : i32
    %1 = arith.addi %0, %arg1 : i32
    %c0_i32 = arith.constant 0 : i32
    %2 = arith.minsi %1, %c0_i32 : i32
    %c0_i32_0 = arith.constant 0 : i32
    %c0_i32_1 = arith.constant 0 : i32
    return %2, %c0_i32_0 : i32, i32
  }
  func.func @transform_2(%arg0: i32, %arg1: i32) -> (i32, i32, i32) {
    %c0_i32 = arith.constant 0 : i32
    %c0_i32_0 = arith.constant 0 : i32
    %c0_i32_1 = arith.constant 0 : i32
    return %arg0, %c0_i32, %c0_i32_0 : i32, i32, i32
  }
}

</mosaic_0001>

<bundles_post_ra>
// kernel: tpu_custom_call.1
= control target key start
LH: loop header
LB: loop body
LE: loop exit
PB: predicated region body
PF: predicated region fallthrough
CT: control target
= control target key end

     0   :  { %7 = vsyncpa [#allocation4], 0  ;;  %s318_s0 = inlined_call_operand.hbm [shape: f32[32,128], index: 0, kind: input, shape index: {}]   ;;  %s319_s1 = inlined_call_operand.hbm [shape: f32[32,128], index: 1, kind: input, shape index: {}]   ;;  %s320_s2 = inlined_call_operand.hbm [shape: f32[1,8,128], index: 2, kind: output, shape index: {}]  }
   0x1   :  { %8 = vsyncpa [#allocation7], 0 }
   0x2   :  { %9 = vsyncpa [#allocation5], 0  ;;  %s20_s11 = sshll.u32 %s318_s0, 4  ;;  %s289_s12 = smov [#allocation3]   ;;  %s21_s11 = int_to_ptr.hbm [resolvable:$true] %s20_s11 }
   0x3   :  { %s22_s13 = sshll.u32 %s289_s12, 4  ;;  %s39_s16 = sshll.u32 %s319_s1, 4  ;;  %s23_s13 = int_to_ptr.vmem [resolvable:$true] %s22_s13  ;;  %s40_s16 = int_to_ptr.hbm [resolvable:$true] %s39_s16 }
   0x4   :  { %s290_s17 = smov 128   ;;  %s291_s18 = smov 8  }
   0x5   :  { %28 = dma.hbm_to_vmem [thread:$0]  %s21_s11, 512, %s23_s13, [#allocation4], %s290_s17, %s290_s17, %s291_s18  }
   0x6   :  { %s292_s19 = smov [#allocation6]  }
   0x7   :  { %s41_s20 = sshll.u32 %s292_s19, 4  ;;  %s42_s20 = int_to_ptr.vmem [resolvable:$true] %s41_s20 }
   0x8   :  { %47 = dma.hbm_to_vmem [thread:$0]  %s40_s16, 512, %s42_s20, [#allocation7], %s290_s17, %s290_s17, %s291_s18  }
   0x9   :  { %283 = dma.done.wait [#allocation4], 512  }
   0xa   :  { %284 = vsyncadd [#allocation4], 4294966784 }
   0xb   :  { %285 = dma.done.wait [#allocation7], 512  }
   0xc   :  { %286 = vsyncadd [#allocation7], 4294966784  ;;  %v88_v0 = vld [vmem:[#allocation3] sm:$0xff]  ;;  %v89_v1 = vld [vmem:[#allocation3 + $0x8] sm:$0xff]  ;;  %s293_s0 = smov [#allocation8]   ;;  %s185_s23 = sshll.u32 %s320_s2, 4  ;;  %s186_s23 = int_to_ptr.hbm [resolvable:$true] %s185_s23 }
   0xd   :  { %v90_v2 = vld [vmem:[#allocation3 + $0x10] sm:$0xff]  ;;  %v91_v3 = vld [vmem:[#allocation3 + $0x18] sm:$0xff]  ;;  %v92_v4 = vmax.f32 %v88_v0, 1e-08  ;;  %v93_v5 = vmax.f32 %v89_v1, 1e-08 }
   0xe   :  { %v96_v6 = vld [vmem:[#allocation6] sm:$0xff]  ;;  %v94_v7 = vmax.f32 %v90_v2, 1e-08  ;;  %v95_v8 = vmax.f32 %v91_v3, 1e-08  ;;  %v97_v9 = vld [vmem:[#allocation6 + $0x8] sm:$0xff] }
   0xf   :  { %v98_v10 = vld [vmem:[#allocation6 + $0x10] sm:$0xff]  ;;  %v99_v11 = vld [vmem:[#allocation6 + $0x18] sm:$0xff]  ;;  %v100_v12 = vmax.f32 %v96_v6, 1e-08  ;;  %v101_v13 = vmax.f32 %v97_v9, 1e-08 }
  0x10   :  { %v102_v14 = vmax.f32 %v98_v10, 1e-08  ;;  %v103_v15 = vmax.f32 %v99_v11, 1e-08  ;;  %s183_s1 = sshll.u32 %s293_s0, 4  ;;  %s184_s1 = int_to_ptr.vmem [resolvable:$true] %s183_s1 }
  0x11   :  { %v104_v16 = vsub.f32 %v92_v4, %v100_v12  ;;  %v105_v17 = vsub.f32 %v93_v5, %v101_v13 }
  0x12   :  { %v106_v18 = vsub.f32 %v94_v7, %v102_v14  ;;  %v107_v19 = vsub.f32 %v95_v8, %v103_v15 }
  0x13   :  { %v112_v20 = vand.u32 2147483647, %v104_v16  ;;  %v113_v21 = vand.u32 2147483647, %v105_v17  ;;  %v120_v22 = vmul.f32 0.5, %v104_v16  ;;  %v121_v23 = vmul.f32 0.5, %v105_v17 }
  0x14   :  { %v114_v24 = vand.u32 2147483647, %v106_v18  ;;  %v115_v25 = vand.u32 2147483647, %v107_v19  ;;  %v122_v26 = vmul.f32 0.5, %v106_v18  ;;  %v123_v27 = vmul.f32 0.5, %v107_v19 }
  0x15   :  { %v124_v28 = vmul.f32 %v120_v22, %v104_v16  ;;  %v125_v29 = vmul.f32 %v121_v23, %v105_v17  ;;  %v200_v31 = vadd.f32 -5.0, %v112_v20  ;;  %v201_v32 = vadd.f32 -5.0, %v113_v21 }
  0x16   :  { %v126_v30 = vmul.f32 %v122_v26, %v106_v18  ;;  %v202_v33 = vadd.f32 -5.0, %v114_v24  ;;  %v203_v34 = vadd.f32 -5.0, %v115_v25  ;;  %vm116_vm0 = vcmp.le.f32.partialorder %v112_v20, 10.0 }
  0x17   :  { %vm117_vm1 = vcmp.le.f32.partialorder %v113_v21, 10.0  ;;  %vm118_vm2 = vcmp.le.f32.partialorder %v114_v24, 10.0  ;;  %v127_v35 = vmul.f32 %v123_v27, %v107_v19  ;;  %v132_v36 = vmul.f32 10.0, %v200_v31 }
  0x18   :  { %v133_v37 = vmul.f32 10.0, %v201_v32  ;;  %v134_v38 = vmul.f32 10.0, %v202_v33  ;;  %v135_v39 = vmul.f32 10.0, %v203_v34  ;;  %vm119_vm3 = vcmp.le.f32.partialorder %v115_v25, 10.0 }
  0x19   :  { %v136_v40 = vsel %vm116_vm0, %v124_v28, %v132_v36 }
  0x1a   :  { %v137_v41 = vsel %vm117_vm1, %v125_v29, %v133_v37  ;;  %v138_v42 = vsel %vm118_vm2, %v126_v30, %v134_v38  ;;  %v139_v44 = vsel %vm119_vm3, %v127_v35, %v135_v39 }
  0x1b   :  { %v163_v43 = vadd.f32 %v137_v41, %v136_v40 }
  0x1d   :  { %v164_v45 = vadd.f32 %v163_v43, %v138_v42 }
  0x1f   :  { %v165_v46 = vadd.f32 %v164_v45, %v139_v44 }
  0x21   :  { %166 = vadd.xlane.f32.xlu0 %v165_v46 }
  0x94   :  { %v167_v47 = vpop.xlane.xlu0 %166 }
  0x95   :  { %v168_v48 = vrot.slane %v167_v47, 4 }
  0x97   :  { %v169_v49 = vadd.f32 %v168_v48, %v167_v47 }
  0x99   :  { %v170_v50 = vrot.slane %v169_v49, 2 }
  0x9b   :  { %v171_v51 = vadd.f32 %v170_v50, %v169_v49 }
  0x9d   :  { %v172_v52 = vrot.slane %v171_v51, 1 }
  0x9f   :  { %v173_v53 = vadd.f32 %v172_v52, %v171_v51 }
  0xa1   :  { %204 = vpush %v173_v53 }
  0xd2   :  { %s205_s24 = spop %204 }
  0xd3   :  { %v175_v54 = vstv %s205_s24 }
  0xd4   :  { %177 = vst [vmem:[#allocation8] sm:$0xff] %v175_v54 }
  0xd5   :  { %188 = dma.vmem_to_hbm [thread:$0]  %s184_s1, 128, %s186_s23, [#allocation5]  }
  0xd6   :  { %287 = dma.done.wait [#allocation5], 128  }
  0xd7   :  { %288 = vsyncadd [#allocation5], 4294967168 }
  0xd8   :  { %193 = vsyncpa [#allocation4], 1 }
  0xd9   :  { %194 = vsyncpa [#allocation7], 1 }
  0xda   :  { %195 = vsyncpa [#allocation5], 1 }

</bundles_post_ra>
